<compile_context>
chip_gen: v6e
topology: v6e:2x2x1
jax: 0.10.0
libtpu: 0.0.40
codegen_flags: <defaults>
</compile_context>

<pallas_src>
import functools

import jax
import jax.numpy as jnp
from jax import lax
from jax.experimental import pallas as pl
from jax.experimental.pallas import tpu as pltpu


def _mhsa_kernel(x_ref, wqkv_ref, bqkv_ref, wo_ref, bo_ref, o_ref, *,
                 head_num, head_dim, seq_len, batch_block):
    """One grid step == `batch_block` batch elements, fully resident in VMEM."""
    E = head_num * head_dim
    S = seq_len
    BB = batch_block
    rows = BB * S

    if BB == 1:
        x = x_ref[0]                                   # (S, E)
    else:
        # Free sublane merge (wrapper asserts S % 8 == 0 when BB > 1).
        x = x_ref[...].reshape(rows, E)                # fold batch block into M

    # Fused QKV projection: one (rows, E) x (E, 3E) MXU push + one bias add.
    # qkv stays f32 -> all softmax math below is f32 (v5e-safe even with bf16
    # matmul operands).
    qkv = (jnp.dot(x, wqkv_ref[...], preferred_element_type=jnp.float32)
           + bqkv_ref[...])                            # (rows, 3E) f32

    scale = 1.0 / (head_dim ** 0.5)
    bo_f32 = bo_ref[...].astype(jnp.float32)           # (1, E)

    for b in range(BB):
        rsl = slice(b * S, (b + 1) * S)
        # Output-projection accumulator for this batch element: start from the
        # bias, add each head's contribution.  Full lane width -> no masked
        # partial stores, and no (rows, E) attention scratch.
        acc = jnp.broadcast_to(bo_f32, (S, E))
        for h in range(head_num):
            cq = slice(h * head_dim, (h + 1) * head_dim)
            ck = slice(E + h * head_dim, E + (h + 1) * head_dim)
            cv = slice(2 * E + h * head_dim, 2 * E + (h + 1) * head_dim)
            q_h = qkv[rsl, cq]                         # (S, D) f32
            k_h = qkv[rsl, ck]                         # (S, D) f32
            v_h = qkv[rsl, cv]                         # (S, D) f32

            # scores = q_h @ k_h.T without materializing the transpose.
            s = lax.dot_general(q_h, k_h, (((1,), (1,)), ((), ())),
                                preferred_element_type=jnp.float32) * scale
            s = s - jnp.max(s, axis=-1, keepdims=True)
            p = jnp.exp(s)
            p = p * pl.reciprocal(jnp.sum(p, axis=-1, keepdims=True),
                                  approx=True)

            o_h = jnp.dot(p, v_h, preferred_element_type=jnp.float32)  # (S, D)

            # Project this head's slice through its rows of Wo^T (static
            # sublane slice of the weight, full-lane-width output) and
            # accumulate.  Cast the small operand to the weight dtype so the
            # matmul runs in bf16 on the MXU when compute_dtype=bf16.
            acc = acc + jnp.dot(o_h.astype(wo_ref.dtype),
                                wo_ref[cq, :],
                                preferred_element_type=jnp.float32)

        o_ref[b] = acc.astype(o_ref.dtype)


def choose_batch_block(B, S, *, target_rows=256, min_grid_steps=2):
    """Largest divisor of B with bb*S <= target_rows (fills the MXU M dim);
    then, if that leaves fewer than `min_grid_steps` grid steps (v7x has 2
    TensorCores), shrink it when doing so keeps a reasonably full tile or when
    rows were sub-tile anyway."""
    divisors = [d for d in range(1, B + 1) if B % d == 0]
    fitting = [d for d in divisors if d * S <= target_rows]
    bb = max(fitting) if fitting else 1
    if B // bb < min_grid_steps:
        parallel = [d for d in divisors if B // d >= min_grid_steps]
        if parallel:
            cand = max(parallel)
            if cand * S >= 128 or bb * S < 128:
                bb = cand
    return bb


def mhsa_pallas(x, params, head_num, *, batch_block=None, compute_dtype=None):
    B, S, E = x.shape
    assert E % head_num == 0
    head_dim = E // head_num
    if batch_block is None:
        batch_block = choose_batch_block(B, S)
    assert B % batch_block == 0
    if batch_block > 1:
        # Guard: the (BB,S,E)->(BB*S,E) fold is only a free sublane merge when
        # S is a multiple of 8; otherwise it would materialize a VMEM copy.
        assert S % 8 == 0, "batch folding requires seq_length % 8 == 0"

    wq, bq, wk, bk, wv, bv, wo, bo = params
    out_dtype = x.dtype

    # One-time wrapper-side weight prep: fuse QKV and pre-transpose to
    # (in_features, out_features) so the kernel does plain x @ W.
    wqkv_t = jnp.concatenate([wq, wk, wv], axis=0).T           # (E, 3E)
    bqkv = jnp.concatenate([bq, bk, bv]).reshape(1, 3 * E)     # (1, 3E)
    wo_t = wo.T                                                # (E, E)
    bo2 = bo.reshape(1, E)                                     # (1, E)

    if compute_dtype is not None:  # e.g. jnp.bfloat16 on v6e/v7x
        x, wqkv_t, bqkv, wo_t, bo2 = (a.astype(compute_dtype)
                                      for a in (x, wqkv_t, bqkv, wo_t, bo2))

    # Explicit VMEM budget (rough working-set estimate, clamped so the limit
    # is also valid on v7x's 64 MiB per-TensorCore VMEM).
    cbytes = jnp.dtype(compute_dtype).itemsize if compute_dtype else 4
    rows = batch_block * S
    est = (2 * (E * 3 * E + E * E + 4 * E) * cbytes               # dbl-buffered weights/biases
           + 2 * rows * E * (cbytes + jnp.dtype(out_dtype).itemsize)  # x / out blocks
           + rows * 3 * E * 4 + rows * E * 4 + S * S * 4)         # qkv / acc / scores
    vmem_limit = int(min(64 * 2**20, max(16 * 2**20, 2 * est)))

    kernel = functools.partial(_mhsa_kernel, head_num=head_num,
                               head_dim=head_dim, seq_len=S,
                               batch_block=batch_block)

    return pl.pallas_call(
        kernel,
        out_shape=jax.ShapeDtypeStruct((B, S, E), out_dtype),
        grid_spec=pltpu.PrefetchScalarGridSpec(
            num_scalar_prefetch=0,
            grid=(B // batch_block,),
            in_specs=[
                pl.BlockSpec((batch_block, S, E), lambda b: (b, 0, 0)),  # x
                pl.BlockSpec((E, 3 * E), lambda b: (0, 0)),              # Wqkv^T
                pl.BlockSpec((1, 3 * E), lambda b: (0, 0)),              # b_qkv
                pl.BlockSpec((E, E), lambda b: (0, 0)),                  # Wo^T
                pl.BlockSpec((1, E), lambda b: (0, 0)),                  # b_o
            ],
            out_specs=pl.BlockSpec((batch_block, S, E), lambda b: (b, 0, 0)),
        ),
        compiler_params=pltpu.CompilerParams(
            dimension_semantics=("parallel",),
            vmem_limit_bytes=vmem_limit),
    )(x, wqkv_t, bqkv, wo_t, bo2)


def mhsa_reference(x, params, head_num):
    """Pure-JAX reference mirroring the PyTorch forward exactly."""
    B, S, E = x.shape
    D = E // head_num
    wq, bq, wk, bk, wv, bv, wo, bo = params
    q = x @ wq.T + bq
    k = x @ wk.T + bk
    v = x @ wv.T + bv
    q = q.reshape(B, S, head_num, D).transpose(0, 2, 1, 3)
    k = k.reshape(B, S, head_num, D).transpose(0, 2, 1, 3)
    v = v.reshape(B, S, head_num, D).transpose(0, 2, 1, 3)
    scores = jnp.einsum("bhqd,bhkd->bhqk", q, k) / (D ** 0.5)
    w = jax.nn.softmax(scores, axis=-1)
    o = jnp.einsum("bhqk,bhkd->bhqd", w, v)
    o = o.transpose(0, 2, 1, 3).reshape(B, S, E)
    return o @ wo.T + bo


def init_params(key, embedding_dim):
    """Deterministic nn.Linear-style init: U(-1/sqrt(in), 1/sqrt(in))."""
    E = embedding_dim
    bound = 1.0 / (E ** 0.5)
    keys = jax.random.split(key, 8)
    params = []
    for i in range(4):  # Wq, Wk, Wv, Wo
        w = jax.random.uniform(keys[2 * i], (E, E), jnp.float32, -bound, bound)
        b = jax.random.uniform(keys[2 * i + 1], (E,), jnp.float32, -bound, bound)
        params.extend([w, b])
    return tuple(params)


if __name__ == "__main__":
    batch_size, seq_length, embedding_dim, head_num = 2, 8, 32, 4

    key = jax.random.PRNGKey(0)
    kx, kp = jax.random.split(key)
    x = jax.random.normal(kx, (batch_size, seq_length, embedding_dim), jnp.float32)
    params = init_params(kp, embedding_dim)

    # f32 path (default): strict correctness check vs the pure-JAX reference.
    out = mhsa_pallas(x, params, head_num)
    out = jax.block_until_ready(out)
    ref = mhsa_reference(x, params, head_num)
    assert out.shape == (batch_size, seq_length, embedding_dim)
    # Tolerance accounts for the approximate (EUP) reciprocal in the softmax.
    assert jnp.allclose(out, ref, atol=1e-3, rtol=1e-3), (
        float(jnp.max(jnp.abs(out - ref))))

    # bf16 matmul-operand path (recommended default on v6e/v7x; f32 accumulate
    # and f32 softmax are preserved): looser numeric check.
    out_bf16 = jax.block_until_ready(
        mhsa_pallas(x, params, head_num, compute_dtype=jnp.bfloat16))
    assert jnp.allclose(out_bf16, ref, atol=1e-1, rtol=1e-1), (
        float(jnp.max(jnp.abs(out_bf16 - ref))))

    print("KERNEL_OK")
</pallas_src>

<mosaic_0001>
module attributes {stable_mosaic.version = 11 : i64} {
  func.func @_mhsa_kernel(%arg0: i32, %arg1: memref<1x8x32xf32, #tpu.memory_space<vmem>>, %arg2: memref<32x96xf32, #tpu.memory_space<vmem>>, %arg3: memref<1x96xf32, #tpu.memory_space<vmem>>, %arg4: memref<32x32xf32, #tpu.memory_space<vmem>>, %arg5: memref<1x32xf32, #tpu.memory_space<vmem>>, %arg6: memref<1x8x32xf32, #tpu.memory_space<vmem>>) attributes {dimension_semantics = [#tpu.dimension_semantics<parallel>], iteration_bounds = array<i64: 2>, scalar_prefetch = 0 : i64, scratch_operands = 0 : i64, tpu.core_type = #tpu.core_type<tc>, window_params = [{transform_indices = @transform_0, window_bounds = array<i64: 1, 8, 32>}, {pipeline_mode = #tpu.pipeline_mode<synchronous>, transform_indices = @transform_1, window_bounds = array<i64: 32, 96>}, {pipeline_mode = #tpu.pipeline_mode<synchronous>, transform_indices = @transform_2, window_bounds = array<i64: 1, 96>}, {pipeline_mode = #tpu.pipeline_mode<synchronous>, transform_indices = @transform_3, window_bounds = array<i64: 32, 32>}, {pipeline_mode = #tpu.pipeline_mode<synchronous>, transform_indices = @transform_4, window_bounds = array<i64: 1, 32>}, {transform_indices = @transform_5, window_bounds = array<i64: 1, 8, 32>}]} {
    %c0 = arith.constant 0 : index
    %c0_0 = arith.constant 0 : index
    %c0_1 = arith.constant 0 : index
    %0 = vector.load %arg1[%c0, %c0_0, %c0_1] : memref<1x8x32xf32, #tpu.memory_space<vmem>>, vector<1x8x32xf32>
    %1 = vector.shape_cast %0 : vector<1x8x32xf32> to vector<8x32xf32>
    %c0_2 = arith.constant 0 : index
    %c0_3 = arith.constant 0 : index
    %2 = vector.load %arg2[%c0_2, %c0_3] : memref<32x96xf32, #tpu.memory_space<vmem>>, vector<32x96xf32>
    %cst = arith.constant dense<0.000000e+00> : vector<8x96xf32>
    %3 = tpu.matmul %1, %2, %cst {dimension_numbers = #tpu.dot_dimension_numbers<[1], [0], [0], [1], [0, 0, 1, 1], [], []>} : vector<8x32xf32>, vector<32x96xf32>, vector<8x96xf32> -> vector<8x96xf32>
    %c0_4 = arith.constant 0 : index
    %c0_5 = arith.constant 0 : index
    %4 = vector.load %arg3[%c0_4, %c0_5] : memref<1x96xf32, #tpu.memory_space<vmem>>, vector<1x96xf32>
    %5 = vector.broadcast %4 : vector<1x96xf32> to vector<8x96xf32>
    %6 = arith.addf %3, %5 : vector<8x96xf32>
    %c0_6 = arith.constant 0 : index
    %c0_7 = arith.constant 0 : index
    %7 = vector.load %arg5[%c0_6, %c0_7] : memref<1x32xf32, #tpu.memory_space<vmem>>, vector<1x32xf32>
    %8 = vector.shape_cast %7 : vector<1x32xf32> to vector<1x32xf32>
    %9 = vector.broadcast %8 : vector<1x32xf32> to vector<8x32xf32>
    %10 = vector.extract_strided_slice %6 {offsets = [0, 0], sizes = [8, 8], strides = [1, 1]} : vector<8x96xf32> to vector<8x8xf32>
    %11 = vector.extract_strided_slice %6 {offsets = [0, 32], sizes = [8, 8], strides = [1, 1]} : vector<8x96xf32> to vector<8x8xf32>
    %12 = vector.extract_strided_slice %6 {offsets = [0, 64], sizes = [8, 8], strides = [1, 1]} : vector<8x96xf32> to vector<8x8xf32>
    %cst_8 = arith.constant dense<0.000000e+00> : vector<8x8xf32>
    %13 = tpu.matmul %10, %11, %cst_8 {dimension_numbers = #tpu.dot_dimension_numbers<[1], [1], [0], [0], [0, 0, 1, 0], [], []>} : vector<8x8xf32>, vector<8x8xf32>, vector<8x8xf32> -> vector<8x8xf32>
    %cst_9 = arith.constant 0.353553385 : f32
    %14 = vector.broadcast %cst_9 : f32 to vector<8x8xf32>
    %15 = arith.mulf %13, %14 : vector<8x8xf32>
    %cst_10 = arith.constant dense<0xFF800000> : vector<8xf32>
    %16 = vector.multi_reduction <maximumf>, %15, %cst_10 [1] : vector<8x8xf32> to vector<8xf32>
    %17 = vector.shape_cast %16 : vector<8xf32> to vector<8x1xf32>
    %18 = vector.broadcast %17 : vector<8x1xf32> to vector<8x8xf32>
    %19 = arith.subf %15, %18 : vector<8x8xf32>
    %20 = math.exp %19 : vector<8x8xf32>
    %cst_11 = arith.constant dense<0.000000e+00> : vector<8xf32>
    %21 = vector.multi_reduction <add>, %20, %cst_11 [1] : vector<8x8xf32> to vector<8xf32>
    %22 = vector.shape_cast %21 : vector<8xf32> to vector<8x1xf32>
    %23 = tpu.reciprocal %22 {approx = true} : vector<8x1xf32> -> vector<8x1xf32>
    %24 = vector.broadcast %23 : vector<8x1xf32> to vector<8x8xf32>
    %25 = arith.mulf %20, %24 : vector<8x8xf32>
    %cst_12 = arith.constant dense<0.000000e+00> : vector<8x8xf32>
    %26 = tpu.matmul %25, %12, %cst_12 {dimension_numbers = #tpu.dot_dimension_numbers<[1], [0], [0], [1], [0, 0, 1, 1], [], []>} : vector<8x8xf32>, vector<8x8xf32>, vector<8x8xf32> -> vector<8x8xf32>
    %c0_13 = arith.constant 0 : index
    %c0_14 = arith.constant 0 : index
    %27 = vector.load %arg4[%c0_13, %c0_14] : memref<32x32xf32, #tpu.memory_space<vmem>>, vector<8x32xf32>
    %cst_15 = arith.constant dense<0.000000e+00> : vector<8x32xf32>
    %28 = tpu.matmul %26, %27, %cst_15 {dimension_numbers = #tpu.dot_dimension_numbers<[1], [0], [0], [1], [0, 0, 1, 1], [], []>} : vector<8x8xf32>, vector<8x32xf32>, vector<8x32xf32> -> vector<8x32xf32>
    %29 = arith.addf %9, %28 : vector<8x32xf32>
    %30 = vector.extract_strided_slice %6 {offsets = [0, 8], sizes = [8, 8], strides = [1, 1]} : vector<8x96xf32> to vector<8x8xf32>
    %31 = vector.extract_strided_slice %6 {offsets = [0, 40], sizes = [8, 8], strides = [1, 1]} : vector<8x96xf32> to vector<8x8xf32>
    %32 = vector.extract_strided_slice %6 {offsets = [0, 72], sizes = [8, 8], strides = [1, 1]} : vector<8x96xf32> to vector<8x8xf32>
    %cst_16 = arith.constant dense<0.000000e+00> : vector<8x8xf32>
    %33 = tpu.matmul %30, %31, %cst_16 {dimension_numbers = #tpu.dot_dimension_numbers<[1], [1], [0], [0], [0, 0, 1, 0], [], []>} : vector<8x8xf32>, vector<8x8xf32>, vector<8x8xf32> -> vector<8x8xf32>
    %cst_17 = arith.constant 0.353553385 : f32
    %34 = vector.broadcast %cst_17 : f32 to vector<8x8xf32>
    %35 = arith.mulf %33, %34 : vector<8x8xf32>
    %cst_18 = arith.constant dense<0xFF800000> : vector<8xf32>
    %36 = vector.multi_reduction <maximumf>, %35, %cst_18 [1] : vector<8x8xf32> to vector<8xf32>
    %37 = vector.shape_cast %36 : vector<8xf32> to vector<8x1xf32>
    %38 = vector.broadcast %37 : vector<8x1xf32> to vector<8x8xf32>
    %39 = arith.subf %35, %38 : vector<8x8xf32>
    %40 = math.exp %39 : vector<8x8xf32>
    %cst_19 = arith.constant dense<0.000000e+00> : vector<8xf32>
    %41 = vector.multi_reduction <add>, %40, %cst_19 [1] : vector<8x8xf32> to vector<8xf32>
    %42 = vector.shape_cast %41 : vector<8xf32> to vector<8x1xf32>
    %43 = tpu.reciprocal %42 {approx = true} : vector<8x1xf32> -> vector<8x1xf32>
    %44 = vector.broadcast %43 : vector<8x1xf32> to vector<8x8xf32>
    %45 = arith.mulf %40, %44 : vector<8x8xf32>
    %cst_20 = arith.constant dense<0.000000e+00> : vector<8x8xf32>
    %46 = tpu.matmul %45, %32, %cst_20 {dimension_numbers = #tpu.dot_dimension_numbers<[1], [0], [0], [1], [0, 0, 1, 1], [], []>} : vector<8x8xf32>, vector<8x8xf32>, vector<8x8xf32> -> vector<8x8xf32>
    %c8 = arith.constant 8 : index
    %c0_21 = arith.constant 0 : index
    %47 = vector.load %arg4[%c8, %c0_21] : memref<32x32xf32, #tpu.memory_space<vmem>>, vector<8x32xf32>
    %cst_22 = arith.constant dense<0.000000e+00> : vector<8x32xf32>
    %48 = tpu.matmul %46, %47, %cst_22 {dimension_numbers = #tpu.dot_dimension_numbers<[1], [0], [0], [1], [0, 0, 1, 1], [], []>} : vector<8x8xf32>, vector<8x32xf32>, vector<8x32xf32> -> vector<8x32xf32>
    %49 = arith.addf %29, %48 : vector<8x32xf32>
    %50 = vector.extract_strided_slice %6 {offsets = [0, 16], sizes = [8, 8], strides = [1, 1]} : vector<8x96xf32> to vector<8x8xf32>
    %51 = vector.extract_strided_slice %6 {offsets = [0, 48], sizes = [8, 8], strides = [1, 1]} : vector<8x96xf32> to vector<8x8xf32>
    %52 = vector.extract_strided_slice %6 {offsets = [0, 80], sizes = [8, 8], strides = [1, 1]} : vector<8x96xf32> to vector<8x8xf32>
    %cst_23 = arith.constant dense<0.000000e+00> : vector<8x8xf32>
    %53 = tpu.matmul %50, %51, %cst_23 {dimension_numbers = #tpu.dot_dimension_numbers<[1], [1], [0], [0], [0, 0, 1, 0], [], []>} : vector<8x8xf32>, vector<8x8xf32>, vector<8x8xf32> -> vector<8x8xf32>
    %cst_24 = arith.constant 0.353553385 : f32
    %54 = vector.broadcast %cst_24 : f32 to vector<8x8xf32>
    %55 = arith.mulf %53, %54 : vector<8x8xf32>
    %cst_25 = arith.constant dense<0xFF800000> : vector<8xf32>
    %56 = vector.multi_reduction <maximumf>, %55, %cst_25 [1] : vector<8x8xf32> to vector<8xf32>
    %57 = vector.shape_cast %56 : vector<8xf32> to vector<8x1xf32>
    %58 = vector.broadcast %57 : vector<8x1xf32> to vector<8x8xf32>
    %59 = arith.subf %55, %58 : vector<8x8xf32>
    %60 = math.exp %59 : vector<8x8xf32>
    %cst_26 = arith.constant dense<0.000000e+00> : vector<8xf32>
    %61 = vector.multi_reduction <add>, %60, %cst_26 [1] : vector<8x8xf32> to vector<8xf32>
    %62 = vector.shape_cast %61 : vector<8xf32> to vector<8x1xf32>
    %63 = tpu.reciprocal %62 {approx = true} : vector<8x1xf32> -> vector<8x1xf32>
    %64 = vector.broadcast %63 : vector<8x1xf32> to vector<8x8xf32>
    %65 = arith.mulf %60, %64 : vector<8x8xf32>
    %cst_27 = arith.constant dense<0.000000e+00> : vector<8x8xf32>
    %66 = tpu.matmul %65, %52, %cst_27 {dimension_numbers = #tpu.dot_dimension_numbers<[1], [0], [0], [1], [0, 0, 1, 1], [], []>} : vector<8x8xf32>, vector<8x8xf32>, vector<8x8xf32> -> vector<8x8xf32>
    %c16 = arith.constant 16 : index
    %c0_28 = arith.constant 0 : index
    %67 = vector.load %arg4[%c16, %c0_28] : memref<32x32xf32, #tpu.memory_space<vmem>>, vector<8x32xf32>
    %cst_29 = arith.constant dense<0.000000e+00> : vector<8x32xf32>
    %68 = tpu.matmul %66, %67, %cst_29 {dimension_numbers = #tpu.dot_dimension_numbers<[1], [0], [0], [1], [0, 0, 1, 1], [], []>} : vector<8x8xf32>, vector<8x32xf32>, vector<8x32xf32> -> vector<8x32xf32>
    %69 = arith.addf %49, %68 : vector<8x32xf32>
    %70 = vector.extract_strided_slice %6 {offsets = [0, 24], sizes = [8, 8], strides = [1, 1]} : vector<8x96xf32> to vector<8x8xf32>
    %71 = vector.extract_strided_slice %6 {offsets = [0, 56], sizes = [8, 8], strides = [1, 1]} : vector<8x96xf32> to vector<8x8xf32>
    %72 = vector.extract_strided_slice %6 {offsets = [0, 88], sizes = [8, 8], strides = [1, 1]} : vector<8x96xf32> to vector<8x8xf32>
    %cst_30 = arith.constant dense<0.000000e+00> : vector<8x8xf32>
    %73 = tpu.matmul %70, %71, %cst_30 {dimension_numbers = #tpu.dot_dimension_numbers<[1], [1], [0], [0], [0, 0, 1, 0], [], []>} : vector<8x8xf32>, vector<8x8xf32>, vector<8x8xf32> -> vector<8x8xf32>
    %cst_31 = arith.constant 0.353553385 : f32
    %74 = vector.broadcast %cst_31 : f32 to vector<8x8xf32>
    %75 = arith.mulf %73, %74 : vector<8x8xf32>
    %cst_32 = arith.constant dense<0xFF800000> : vector<8xf32>
    %76 = vector.multi_reduction <maximumf>, %75, %cst_32 [1] : vector<8x8xf32> to vector<8xf32>
    %77 = vector.shape_cast %76 : vector<8xf32> to vector<8x1xf32>
    %78 = vector.broadcast %77 : vector<8x1xf32> to vector<8x8xf32>
    %79 = arith.subf %75, %78 : vector<8x8xf32>
    %80 = math.exp %79 : vector<8x8xf32>
    %cst_33 = arith.constant dense<0.000000e+00> : vector<8xf32>
    %81 = vector.multi_reduction <add>, %80, %cst_33 [1] : vector<8x8xf32> to vector<8xf32>
    %82 = vector.shape_cast %81 : vector<8xf32> to vector<8x1xf32>
    %83 = tpu.reciprocal %82 {approx = true} : vector<8x1xf32> -> vector<8x1xf32>
    %84 = vector.broadcast %83 : vector<8x1xf32> to vector<8x8xf32>
    %85 = arith.mulf %80, %84 : vector<8x8xf32>
    %cst_34 = arith.constant dense<0.000000e+00> : vector<8x8xf32>
    %86 = tpu.matmul %85, %72, %cst_34 {dimension_numbers = #tpu.dot_dimension_numbers<[1], [0], [0], [1], [0, 0, 1, 1], [], []>} : vector<8x8xf32>, vector<8x8xf32>, vector<8x8xf32> -> vector<8x8xf32>
    %c24 = arith.constant 24 : index
    %c0_35 = arith.constant 0 : index
    %87 = vector.load %arg4[%c24, %c0_35] : memref<32x32xf32, #tpu.memory_space<vmem>>, vector<8x32xf32>
    %cst_36 = arith.constant dense<0.000000e+00> : vector<8x32xf32>
    %88 = tpu.matmul %86, %87, %cst_36 {dimension_numbers = #tpu.dot_dimension_numbers<[1], [0], [0], [1], [0, 0, 1, 1], [], []>} : vector<8x8xf32>, vector<8x32xf32>, vector<8x32xf32> -> vector<8x32xf32>
    %89 = arith.addf %69, %88 : vector<8x32xf32>
    %c0_37 = arith.constant 0 : index
    %c0_38 = arith.constant 0 : index
    %c0_39 = arith.constant 0 : index
    %90 = vector.load %arg6[%c0_37, %c0_38, %c0_39] : memref<1x8x32xf32, #tpu.memory_space<vmem>>, vector<1x8x32xf32>
    %91 = vector.shape_cast %90 : vector<1x8x32xf32> to vector<8x32xf32>
    %92 = vector.shape_cast %89 : vector<8x32xf32> to vector<1x8x32xf32>
    tpu.vector_store %arg6[%c0_37, %c0_38, %c0_39], %92 {strides = array<i32>} : memref<1x8x32xf32, #tpu.memory_space<vmem>>, vector<1x8x32xf32>,
    return
  }
  func.func @transform_0(%arg0: i32) -> (i32, i32, i32) {
    %c0_i32 = arith.constant 0 : i32
    %c0_i32_0 = arith.constant 0 : i32
    %c0_i32_1 = arith.constant 0 : i32
    return %arg0, %c0_i32, %c0_i32_0 : i32, i32, i32
  }
  func.func @transform_1(%arg0: i32) -> (i32, i32) {
    %c0_i32 = arith.constant 0 : i32
    %c0_i32_0 = arith.constant 0 : i32
    %c0_i32_1 = arith.constant 0 : i32
    return %c0_i32, %c0_i32_0 : i32, i32
  }
  func.func @transform_2(%arg0: i32) -> (i32, i32) {
    %c0_i32 = arith.constant 0 : i32
    %c0_i32_0 = arith.constant 0 : i32
    %c0_i32_1 = arith.constant 0 : i32
    return %c0_i32, %c0_i32_0 : i32, i32
  }
  func.func @transform_3(%arg0: i32) -> (i32, i32) {
    %c0_i32 = arith.constant 0 : i32
    %c0_i32_0 = arith.constant 0 : i32
    %c0_i32_1 = arith.constant 0 : i32
    return %c0_i32, %c0_i32_0 : i32, i32
  }
  func.func @transform_4(%arg0: i32) -> (i32, i32) {
    %c0_i32 = arith.constant 0 : i32
    %c0_i32_0 = arith.constant 0 : i32
    %c0_i32_1 = arith.constant 0 : i32
    return %c0_i32, %c0_i32_0 : i32, i32
  }
  func.func @transform_5(%arg0: i32) -> (i32, i32, i32) {
    %c0_i32 = arith.constant 0 : i32
    %c0_i32_0 = arith.constant 0 : i32
    %c0_i32_1 = arith.constant 0 : i32
    return %arg0, %c0_i32, %c0_i32_0 : i32, i32, i32
  }
}

</mosaic_0001>

<bundles_post_ra>
// kernel: tpu_custom_call.1
= control target key start
LH: loop header
LB: loop body
LE: loop exit
PB: predicated region body
PF: predicated region fallthrough
CT: control target
= control target key end

     0   :  { %10 = vsyncpa [#allocation3], 0  ;;  %s2125_s0 = inlined_call_operand.hbm [shape: f32[2,8,32], index: 0, kind: input, shape index: {}]   ;;  %s2126_s1 = inlined_call_operand.hbm [shape: f32[32,96], index: 1, kind: input, shape index: {}]   ;;  %s2127_s2 = inlined_call_operand.vmem [shape: f32[1,96], index: 2, kind: input, shape index: {}]   ;;  %s2128_s3 = inlined_call_operand.hbm [shape: f32[32,32], index: 3, kind: input, shape index: {}]   ;;  %s2129_s4 = inlined_call_operand.vmem [shape: f32[1,32], index: 4, kind: input, shape index: {}]   ;;  %s2130_s5 = inlined_call_operand.hbm [shape: f32[2,8,32], index: 5, kind: output, shape index: {}]  }
   0x1   :  { %12 = vsyncpa [#allocation3 + $0x1], 0 }
   0x2   :  { %13 = vsyncpa [#allocation6], 0 }
   0x3   :  { %14 = vsyncpa [#allocation4], 0 }
   0x4   :  { %16 = vsyncpa [#allocation4 + $0x1], 0  ;;  %s1862_s18 = smov 0   ;;  %s1864_s19 = smov 0  }
   0x5   :  { %s1866_s20 = smov 0   ;;  %s1868_s21 = smov 0  }
   0x6 LB: > { %s1883_s22 = sadd.s32 4294967295, %s1811_s21   ;;  %s1430_s23 = sadd.s32 4294967294, %s1811_s21   ;;  %s1811_s21 = sphi %s1868_s21, %s2152_s21   ;;  %s1807_s20 = sphi %s1866_s20, %s2151_s20   ;;  %s1803_s19 = sphi %s1864_s19, %s2150_s19   ;;  %s1799_s18 = sphi %s1862_s18, %s2149_s18  }
   0x7   : > { %p42_p0 = scmp.ne.s32.totalorder %s1803_s19, %s1799_s18  ;;  %p2131_p1 = scmp.eq.s32.totalorder %s1883_s22, 0 }
   0x8   : > { %p156_p3 = scmp.eq.s32.totalorder %s1430_s23, 1  ;;  %p1431_p5 = scmp.ge.s32.totalorder %s1811_s21, 1 }
   0x9   : > { %p1892_p4 = por %p2131_p1, %p42_p0  ;;  %p163_p7 = scmp.lt.s32.totalorder %s1811_s21, 3 }
   0xa   : > { %p1897_p6 = por %p156_p3, %p42_p0  ;;  %s1813_s27 = smov [#allocation5]  }
   0xb   : > { %s2135_s24 = scalar_select %p1892_p4, 1, 0 }
   0xc   : > { %s2136_s25 = scalar_select %p1897_p6, 1, 0 }
   0xd   : > { %p1902_p8 = pnand %p1431_p5, %p163_p7  ;;  %s175_s28 = sshll.u32 %s1813_s27, 4  ;;  %s176_s28 = int_to_ptr.vmem [resolvable:$true] %s175_s28 }
   0xe   : > { %s1814_s30 = smov [#allocation7]   ;;  %s1674_s7 = scalar_lea.vmem %s176_s28, 512 }
   0xf   : > { %s2137_s26 = scalar_select %p1902_p8, 1, 0 }
  0x10   : > { %p1577_p9 = pneg %p1902_p8  ;;  %s191_s6 = sshll.u32 %s1814_s30, 4  ;;  %s192_s6 = int_to_ptr.vmem [resolvable:$true] %s191_s6 }
  0x11   : > { %p1675_p13 = scmp.ne.s32.totalorder %s176_s28, %s1674_s7  ;;  %p1682_p5 = scmp.lt.s32.totalorder %s176_s28, %s176_s28 }
  0x12   : > { %p1911_p11 = pnand %p1577_p9, %p2131_p1  ;;  %p1683_p7 = scmp.lt.s32.totalorder %s1674_s7, %s1674_s7 }
  0x14   : > { %p1665_p12 = pneg %p1911_p11  ;;  %p1684_p10 = por %p1683_p7, %p1682_p5 }
  0x16   : > { %p1677_p0 = pnand %p1675_p13, %p1665_p12 }
  0x18   : > { %p1678_p3 = pneg %p1677_p0 }
  0x1a   : > { %p1685_p9 = pnand %p1684_p10, %p1678_p3 }
  0x1c   : > { %1688 = shalt.err (!%p1685_p9)
}
  0x1d   : > { %s1815_s8 = smov 128   ;;  %s1816_s9 = smov 8  }
  0x1e   : > { %1580 = dma.hbm_to_vmem [thread:$0]  (!%p1911_p11), %s2126_s1, 512, %s176_s28, [#allocation6], %s1815_s8, %s1815_s8, %s1816_s9  }
  0x1f   : > { %s1700_s12 = scalar_lea.vmem %s192_s6, 512  ;;  %p1708_p2 = scmp.lt.s32.totalorder %s192_s6, %s192_s6 }
  0x20   : > { %p1701_p1 = scmp.ne.s32.totalorder %s192_s6, %s1700_s12  ;;  %p1709_p6 = scmp.lt.s32.totalorder %s1700_s12, %s1700_s12 }
  0x22   : > { %p1703_p13 = pnand %p1701_p1, %p1665_p12  ;;  %p1710_p5 = por %p1709_p6, %p1708_p2 }
  0x24   : > { %p1704_p0 = pneg %p1703_p13 }
  0x26   : > { %p1711_p10 = pnand %p1710_p5, %p1704_p0 }
  0x28   : > { %1714 = shalt.err (!%p1711_p10)
}
  0x29   : > { %1583 = dma.hbm_to_vmem [thread:$0]  (!%p1911_p11), %s2128_s3, 512, %s192_s6, [#allocation6], %s1815_s8, %s1815_s8, %s1816_s9  }
  0x2a   : > { %s1934_s15 = sadd.s32 1, %s1811_s21   ;;  %s29_s16 = sadd.s32 1, %s1807_s20 }
  0x2b   : > { %s26_s17 = ssub.s32 %s1811_s21, %s1934_s15  ;;  %p36_p1 = scmp.ne.s32.totalorder %s1807_s20, %s1803_s19 }
  0x2c   : > { %p27_p2 = scmp.eq.s32.totalorder %s26_s17, 0  ;;  %p37_p6 = scmp.eq.s32.totalorder %s1811_s21, 0 }
  0x2d   : > { %p2139_p12 = scmp.eq.s32.totalorder %s1883_s22, 1  ;;  %p1594_p7 = scmp.lt.s32.totalorder %s1811_s21, 2 }
  0x2e   : > { %s1950_s27 = scalar_select %p27_p2, %s1807_s20, %s29_s16  }
  0x2f   : > { %p1944_p3 = por %p2139_p12, %p36_p1  ;;  %p38_p9 = por %p37_p6, %p36_p1 }
  0x30   : > { %s208_s28 = sand.u32 1, %s1807_s20   ;;  %s1436_s30 = sshll.u32 %s1811_s21, 7 }
  0x31   : > { %s2140_s23 = scalar_select %p1944_p3, 1, 0 }
  0x32   : > { %s1435_s29 = sshll.u32 %s208_s28, 3  ;;  %s1957_s8 = scalar_lea.hbm %s2125_s0, %s1436_s30 }
  0x33   : > { %s212_s9 = scalar_lea.vmem [#allocation2], %s1435_s29  ;;  %p1959_p11 = pnand %p1594_p7, %p38_p9 }
  0x34   : > { %s219_s10 = sshll.u32 %s212_s9, 4  ;;  %s209_s12 = scalar_lea.sflag [#allocation3], %s208_s28  ;;  %s220_s10 = int_to_ptr.vmem [resolvable:$true] %s219_s10 }
  0x35   : > { %s1715_s13 = scalar_lea.hbm %s1957_s8, 128  ;;  %p1717_p0 = pneg %p1959_p11 }
  0x36   : > { %p1716_p13 = scmp.ne.s32.totalorder %s1957_s8, %s1715_s13  ;;  %s1720_s17 = scalar_lea.hbm %s2125_s0, 256 }
  0x37   : > { %p1721_p1 = scmp.lt.s32.totalorder %s1957_s8, %s2125_s0  ;;  %p1722_p2 = scmp.lt.s32.totalorder %s1720_s17, %s1715_s13 }
  0x38   : > { %p1718_p5 = pnand %p1717_p0, %p1716_p13 }
  0x39   : > { %p1723_p6 = por %p1722_p2, %p1721_p1 }
  0x3a   : > { %p1719_p10 = pneg %p1718_p5 }
  0x3c   : > { %p1724_p12 = pnand %p1723_p6, %p1719_p10 }
  0x3e   : > { %1727 = shalt.err (!%p1724_p12)
}
  0x3f   : > { %s1728_s6 = scalar_lea.vmem %s220_s10, 128  ;;  %s1817_s28 = smov [#allocation2]  }
  0x40   : > { %p1729_p7 = scmp.ne.s32.totalorder %s220_s10, %s1728_s6  ;;  %s1733_s7 = sshll.u32 %s1817_s28, 4  ;;  %s1734_s7 = int_to_ptr.vmem [resolvable:$false] %s1733_s7 }
  0x41   : > { %s1735_s9 = scalar_lea.vmem %s1734_s7, 256  ;;  %p1736_p13 = scmp.lt.s32.totalorder %s220_s10, %s1734_s7 }
  0x42   : > { %p1731_p9 = pnand %p1729_p7, %p1717_p0  ;;  %p1737_p5 = scmp.lt.s32.totalorder %s1735_s9, %s1728_s6 }
  0x44   : > { %p1732_p3 = pneg %p1731_p9  ;;  %p1738_p4 = por %p1737_p5, %p1736_p13 }
  0x46   : > { %p1739_p8 = pnand %p1738_p4, %p1732_p3 }
  0x48   : > { %1742 = shalt.err (!%p1739_p8)
}
  0x49   : > { %1587 = dma.hbm_to_vmem [thread:$0]  (!%p1959_p11), %s1957_s8, 128, %s220_s10, %s209_s12  }
  0x4a   : > { %p2142_p10 = scmp.ne.s32.totalorder %s2137_s26, 0 }
  0x4b   : > { %s1980_s13 = sand.u32 (!%p2142_p10), 1, %s1803_s19   ;;  %p2143_p4 = scmp.ne.s32.totalorder (!%p2142_p10), %s2135_s24, 0 }
  0x4c   : > { %228 = sbr.rel (%p2142_p10) target bundleno = 2849 (0xb21), region = 40  ;;  %s1438_s14 = sshll.u32 (!%p2142_p10), %s1980_s13, 3 }
  0x4d   : > { %s231_s16 = scalar_lea.sflag (!%p2142_p10), [#allocation3], %s1980_s13  ;;  %s234_s17 = scalar_lea.vmem (!%p2142_p10), [#allocation2], %s1438_s14 }
  0x51   : > { %1786 = dma.done.wait (%p2143_p4), %s231_s16, 128  }
  0x52   : > { %1788 = vsyncadd (%p2143_p4), %s231_s16, 4294967168  ;;  %p2144_p8 = scmp.eq.s32.totalorder %s1883_s22, 0 }
  0x54   : > { %1790 = dma.done.wait (%p2144_p8), [#allocation6], 1024   ;;  %p2145_p3 = pmov %p2144_p8 }
  0x55   : > { %v1818_v0 = vmov 0.0   ;;  %vm1819_vm0 = vmmov 0   ;;  %v273_v1 = vld [vmem:[#allocation5 + $0x18] sm:$0xff]  ;;  %v272_v2 = vld [vmem:[#allocation5 + $0x10] sm:$0xff]  ;;  %v271_v3 = vld [vmem:[#allocation5 + $0x8] sm:$0xff]  ;;  %vm281_vm1 = vcmask 261120  }
  0x56   : > { %1792 = vsyncadd (%p2145_p3), [#allocation6], 4294966272  ;;  %1494 = vmatprep.subr.mxu0 %v1818_v0  ;;  %1502 = vmatprep.mubr.msk.f32.mxu0 %vm1819_vm0, %v1818_v0  ;;  %v270_v4 = vld [vmem:[#allocation5] sm:$0xff]  ;;  %v269_v5 = vld [vmem:[%s234_s17] sm:$0xff]  ;;  %s1820_s8 = smov 64   ;;  %s1821_s10 = smov 96  }
  0x57   : > { %1505 = vmatprep.subr.mxu1 %v1818_v0  ;;  %1507 = vmatprep.mubr.msk.f32.mxu1 %vm1819_vm0, %v1818_v0  ;;  %v1442_v6 = vld [vmem:[%s2127_s2] ss:$0 sm:$0xff]  ;;  %s1822_s11 = smov 88   ;;  %vm365_vm2 = vcmask 64512   ;;  %s1823_s12 = smov 56   ;;  %v528_v21 = vld [vmem:[#allocation7] sm:$0xff] }
  0x58   : > { %1495 = vmatpush3.msra.mxu0 %v273_v1  ;;  %s1824_s30 = smov 120   ;;  %s1825_s29 = smov 80   ;;  %v769_v46 = vld [vmem:[#allocation7 + $0x8] sm:$0xff]  ;;  %v1444_v59 = vld [vmem:[%s2129_s4] ss:$0 sm:$0xff] }
  0x59   : > { %1496 = vmatprep.subr.mxu0 %v1818_v0  ;;  %s1826_s6 = smov 112   ;;  %s1827_s28 = smov 48  }
  0x5a   : > { %1497 = vmatpush3.msra.mxu0 %v272_v2  ;;  %s1828_s7 = smov 72   ;;  %s1829_s9 = smov 104  }
  0x5b   : > { %1498 = vmatprep.subr.mxu0 %v1818_v0  ;;  %s1830_s24 = smov 40   ;;  %s1462_s26 = sshll.u32 %s1883_s22, 7 }
  0x5c   : > { %1499 = vmatpush3.msra.mxu0 %v271_v3  ;;  %p2146_p0 = scmp.ne.s32.totalorder %s2140_s23, 0  ;;  %s1831_s22 = smov [#allocation8]  }
  0x5d   : > { %1500 = vmatprep.subr.mxu0 %v1818_v0 }
  0x5e   : > { %1501 = vmatpush3.msra.mxu0 %v270_v4 }
  0x5f   : > { %1503 = vmatmul.mubr.msk.f32.vlgmr.msra.gmra.mxu0 %vm281_vm1, %v269_v5  ;;  %1515 = vmatprep.subr.mxu0 %v1818_v0 }
  0x60   : > { %1517 = vmatprep.mubr.msk.f32.mxu0 %vm1819_vm0, %v1818_v0  ;;  %1516 = vmatpush3.msra.mxu0 %v528_v21 }
  0x61   : > { %1525 = vmatprep.subr.mxu0 %v1818_v0 }
 0x11f   : > { %v351_v7 = vpop.f32.mrf.mxu0 }
 0x120   : > { %v2010_v8 = vadd.f32 %v1442_v6, %v351_v7  ;;  %v1010_v6 = vld [vmem:[#allocation7 + $0x10] sm:$0xff] }
 0x121   : > { %v1504_v9 = vpop.f32.mrf.mxu0 }
 0x122   : > { %452 = vrot.lane.b32.xlu1 %v2010_v8, %s1820_s8  ;;  %363 = vrot.lane.b32.xlu0 %v2010_v8, %s1821_s10  ;;  %s268_s8 = scalar_lea.vmem [#allocation8], %s1438_s14  ;;  %s1747_s14 = sshll.u32 %s1831_s22, 4  ;;  %s1748_s14 = int_to_ptr.vmem [resolvable:$false] %s1747_s14 }
 0x123   : > { %s1341_s10 = sshll.u32 %s268_s8, 4  ;;  %s1342_s10 = int_to_ptr.vmem [resolvable:$true] %s1341_s10 }
 0x124   : > { %p1750_p6 = scmp.lt.s32.totalorder %s1342_s10, %s1748_s14 }
 0x126   : > { %605 = vrot.lane.b32.xlu1 %v2010_v8, %s1822_s11 }
 0x194   : > { %v364_v10 = vpop.permute.xlu0 %363  ;;  %v453_v11 = vpop.permute.xlu1 %452 }
 0x195   : > { %1506 = vmatpush3.xpose.msk.msra.mxu1 %vm365_vm2, %v364_v10 }
 0x196   : > { %1510 = vmatprep.subr.mxu1 %v1818_v0 }
 0x198   : > { %1508 = vmatmul.mubr.msk.f32.vlgmr.msra.gmra.mxu1 %vm365_vm2, %v2010_v8  ;;  %v606_v22 = vpop.permute.xlu1 %605 }
 0x199   : > { %1511 = vmatpush3.msra.mxu1 %v453_v11  ;;  %1512 = vmatprep.mubr.msk.f32.mxu1 %vm1819_vm0, %v1818_v0 }
 0x19a   : > { %1520 = vmatprep.subr.mxu1 %v1818_v0 }
 0x258   : > { %v436_v12 = vpop.f32.mrf.mxu1 }
 0x259   : > { %v440_v13 = vmul.f32 0.35355338, %v436_v12 }
 0x25a   : > { %v1509_v14 = vpop.f32.mrf.mxu1 }
 0x25b   : > { %v441_v15 = vsel %vm365_vm2, %v440_v13, -inf }
 0x25c   : > { %442 = vmax.xlane.f32.xlu0 %v441_v15 }
 0x272   : > { %693 = vrot.lane.b32.xlu0 %v2010_v8, %s1823_s12 }
 0x2e5   : > { %v443_v16 = vpop.xlane.xlu0 %442 }
 0x2e6   : > { %v444_v17 = vsub.f32 %v440_v13, %v443_v16 }
 0x2e8   : > { %v445_v18 = vmul.f32 1.442695, %v444_v17 }
 0x2e9   : > { %v694_v28 = vpop.permute.xlu0 %693 }
 0x2ea   : > { %1647 = vpow2.f32 %v445_v18 }
 0x2f7   : > { %v1648_v19 = vpop.eup %1647 }
 0x2f8   : > { %v447_v20 = vsel %vm365_vm2, %v1648_v19, 0.0 }
 0x2f9   : > { %448 = vadd.xlane.f32.xlu1 %v447_v20 }
 0x30a   : > { %603 = vrot.lane.b32.xlu1 %v2010_v8, %s1824_s30  ;;  %s2087_s30 = scalar_lea.hbm %s2130_s5, %s1462_s26 }
 0x382   : > { %v449_v23 = vpop.xlane.xlu1 %448 }
 0x383   : > { %1649 = vrcp.f32 %v449_v23 }
 0x386   : > { %v604_v26 = vpop.permute.xlu1 %603 }
 0x390   : > { %v1650_v24 = vpop.eup %1649 }
 0x391   : > { %v451_v25 = vmul.f32 %v1650_v24, %v1648_v19  ;;  %v1251_v19 = vld [vmem:[#allocation7 + $0x18] sm:$0xff] }
 0x393   : > { %1513 = vmatmul.mubr.msk.f32.vlgmr.msra.gmra.mxu1 %vm365_vm2, %v451_v25 }
 0x394   : > { %1521 = vmatpush3.xpose.msk.msra.mxu1 %vm365_vm2, %v606_v22  ;;  %1522 = vmatprep.mubr.msk.f32.mxu1 %vm1819_vm0, %v1818_v0 }
 0x395   : > { %1530 = vmatprep.subr.mxu1 %v1818_v0 }
 0x397   : > { %1523 = vmatmul.mubr.msk.f32.vlgmr.msra.gmra.mxu1 %vm365_vm2, %v604_v26 }
 0x398   : > { %1532 = vmatprep.mubr.msk.f32.mxu1 %vm1819_vm0, %v1818_v0  ;;  %1531 = vmatpush3.msra.mxu1 %v769_v46 }
 0x399   : > { %1540 = vmatprep.subr.mxu1 %v1818_v0 }
 0x453   : > { %v524_v27 = vpop.f32.mrf.mxu1 }
 0x454   : > { %1518 = vmatmul.mubr.msk.f32.vlgmr.msra.gmra.mxu0 %vm365_vm2, %v524_v27 }
 0x455   : > { %1526 = vmatpush3.msra.mxu0 %v694_v28  ;;  %v1514_v29 = vpop.f32.mrf.mxu1  ;;  %1527 = vmatprep.mubr.msk.f32.mxu0 %vm1819_vm0, %v1818_v0 }
 0x456   : > { %1535 = vmatprep.subr.mxu0 %v1818_v0 }
 0x457   : > { %v677_v30 = vpop.f32.mrf.mxu1 }
 0x458   : > { %v681_v31 = vmul.f32 0.35355338, %v677_v30 }
 0x459   : > { %v1524_v32 = vpop.f32.mrf.mxu1 }
 0x45a   : > { %v682_v33 = vsel %vm365_vm2, %v681_v31, -inf }
 0x45b   : > { %683 = vmax.xlane.f32.xlu1 %v682_v33 }
 0x4e4   : > { %v684_v34 = vpop.xlane.xlu1 %683 }
 0x4e5   : > { %v685_v35 = vsub.f32 %v681_v31, %v684_v34 }
 0x4e7   : > { %v686_v36 = vmul.f32 1.442695, %v685_v35 }
 0x4e9   : > { %1651 = vpow2.f32 %v686_v36 }
 0x4f6   : > { %v1652_v37 = vpop.eup %1651 }
 0x4f7   : > { %v688_v38 = vsel %vm365_vm2, %v1652_v37, 0.0 }
 0x4f8   : > { %689 = vadd.xlane.f32.xlu0 %v688_v38 }
 0x50e   : > { %846 = vrot.lane.b32.xlu0 %v2010_v8, %s1825_s29  ;;  %s1328_s29 = scalar_lea.sflag [#allocation4], %s1980_s13 }
 0x512   : > { %844 = vrot.lane.b32.xlu0 %v2010_v8, %s1826_s6  ;;  %s1743_s6 = scalar_lea.vmem %s1342_s10, 128 }
 0x513   : > { %p1744_p11 = scmp.ne.s32.totalorder %s1342_s10, %s1743_s6 }
 0x514   : > { %v598_v39 = vpop.f32.mrf.mxu0 }
 0x515   : > { %v602_v60 = vadd.f32 %v1444_v59, %v598_v39  ;;  %p1745_p1 = pnand %p1744_p11, %p2146_p0 }
 0x516   : > { %v1519_v40 = vpop.f32.mrf.mxu0 }
 0x517   : > { %p1746_p2 = pneg %p1745_p1 }
 0x581   : > { %v690_v41 = vpop.xlane.xlu0 %689 }
 0x582   : > { %1653 = vrcp.f32 %v690_v41 }
 0x585   : > { %v847_v43 = vpop.permute.xlu0 %846 }
 0x589   : > { %v845_v45 = vpop.permute.xlu0 %844 }
 0x58f   : > { %v1654_v42 = vpop.eup %1653 }
 0x590   : > { %v692_v44 = vmul.f32 %v1654_v42, %v1652_v37 }
 0x592   : > { %1528 = vmatmul.mubr.msk.f32.vlgmr.msra.gmra.mxu0 %vm365_vm2, %v692_v44 }
 0x593   : > { %1536 = vmatpush3.xpose.msk.msra.mxu0 %vm365_vm2, %v847_v43  ;;  %1537 = vmatprep.mubr.msk.f32.mxu0 %vm1819_vm0, %v1818_v0 }
 0x594   : > { %1545 = vmatprep.subr.mxu0 %v1818_v0 }
 0x596   : > { %1538 = vmatmul.mubr.msk.f32.vlgmr.msra.gmra.mxu0 %vm365_vm2, %v845_v45 }
 0x597   : > { %1547 = vmatprep.mubr.msk.f32.mxu0 %vm1819_vm0, %v1818_v0  ;;  %1546 = vmatpush3.msra.mxu0 %v1010_v6 }
 0x598   : > { %1555 = vmatprep.subr.mxu0 %v1818_v0 }
 0x652   : > { %v765_v47 = vpop.f32.mrf.mxu0 }
 0x653   : > { %1533 = vmatmul.mubr.msk.f32.vlgmr.msra.gmra.mxu1 %vm365_vm2, %v765_v47 }
 0x654   : > { %v1529_v48 = vpop.f32.mrf.mxu0  ;;  %1542 = vmatprep.mubr.msk.f32.mxu1 %vm1819_vm0, %v1818_v0 }
 0x656   : > { %v918_v49 = vpop.f32.mrf.mxu0 }
 0x657   : > { %v922_v50 = vmul.f32 0.35355338, %v918_v49 }
 0x658   : > { %v1539_v51 = vpop.f32.mrf.mxu0 }
 0x659   : > { %v923_v52 = vsel %vm365_vm2, %v922_v50, -inf }
 0x65a   : > { %924 = vmax.xlane.f32.xlu1 %v923_v52 }
 0x66b   : > { %934 = vrot.lane.b32.xlu1 %v2010_v8, %s1827_s28  ;;  %s1749_s28 = scalar_lea.vmem %s1748_s14, 256 }
 0x66c   : > { %p1751_p12 = scmp.lt.s32.totalorder %s1749_s28, %s1743_s6 }
 0x66e   : > { %p1752_p7 = por %p1751_p12, %p1750_p6 }
 0x66f   : > { %1087 = vrot.lane.b32.xlu1 %v2010_v8, %s1828_s7 }
 0x670   : > { %p1753_p9 = pnand %p1752_p7, %p1746_p2 }
 0x673   : > { %1085 = vrot.lane.b32.xlu1 %v2010_v8, %s1829_s9 }
 0x6e3   : > { %v925_v53 = vpop.xlane.xlu1 %924 }
 0x6e4   : > { %v926_v54 = vsub.f32 %v922_v50, %v925_v53 }
 0x6e6   : > { %v927_v55 = vmul.f32 1.442695, %v926_v54 }
 0x6e7   : > { %v935_v56 = vpop.permute.xlu1 %934 }
 0x6e8   : > { %1655 = vpow2.f32 %v927_v55  ;;  %1541 = vmatpush3.msra.mxu1 %v935_v56 }
 0x6e9   : > { %1550 = vmatprep.subr.mxu1 %v1818_v0 }
 0x6eb   : > { %v1088_v3 = vpop.permute.xlu1 %1087 }
 0x6ef   : > { %v1086_v5 = vpop.permute.xlu1 %1085 }
 0x6f5   : > { %v1656_v57 = vpop.eup %1655 }
 0x6f6   : > { %v929_v58 = vsel %vm365_vm2, %v1656_v57, 0.0 }
 0x6f7   : > { %930 = vadd.xlane.f32.xlu0 %v929_v58 }
 0x713   : > { %v839_v61 = vpop.f32.mrf.mxu1 }
 0x714   : > { %v843_v62 = vadd.f32 %v839_v61, %v602_v60 }
 0x715   : > { %v1534_v63 = vpop.f32.mrf.mxu1 }
 0x780   : > { %v931_v1 = vpop.xlane.xlu0 %930 }
 0x781   : > { %1657 = vrcp.f32 %v931_v1 }
 0x78e   : > { %v1658_v2 = vpop.eup %1657 }
 0x78f   : > { %v933_v4 = vmul.f32 %v1658_v2, %v1656_v57 }
 0x791   : > { %1543 = vmatmul.mubr.msk.f32.vlgmr.msra.gmra.mxu1 %vm365_vm2, %v933_v4 }
 0x792   : > { %1551 = vmatpush3.xpose.msk.msra.mxu1 %vm365_vm2, %v1088_v3  ;;  %1552 = vmatprep.mubr.msk.f32.mxu1 %vm1819_vm0, %v1818_v0 }
 0x793   : > { %1560 = vmatprep.subr.mxu1 %v1818_v0 }
 0x795   : > { %1553 = vmatmul.mubr.msk.f32.vlgmr.msra.gmra.mxu1 %vm365_vm2, %v1086_v5 }
 0x796   : > { %1562 = vmatprep.mubr.msk.f32.mxu1 %vm1819_vm0, %v1818_v0  ;;  %1561 = vmatpush3.msra.mxu1 %v1251_v19 }
 0x851   : > { %v1006_v7 = vpop.f32.mrf.mxu1 }
 0x852   : > { %1548 = vmatmul.mubr.msk.f32.vlgmr.msra.gmra.mxu0 %vm365_vm2, %v1006_v7 }
 0x853   : > { %v1544_v9 = vpop.f32.mrf.mxu1  ;;  %1557 = vmatprep.mubr.msk.f32.mxu0 %vm1819_vm0, %v1818_v0 }
 0x855   : > { %v1159_v10 = vpop.f32.mrf.mxu1 }
 0x856   : > { %v1163_v11 = vmul.f32 0.35355338, %v1159_v10 }
 0x857   : > { %v1554_v12 = vpop.f32.mrf.mxu1 }
 0x858   : > { %v1164_v13 = vsel %vm365_vm2, %v1163_v11, -inf }
 0x859   : > { %1165 = vmax.xlane.f32.xlu1 %v1164_v13 }
 0x8e2   : > { %v1166_v14 = vpop.xlane.xlu1 %1165 }
 0x8e3   : > { %v1167_v15 = vsub.f32 %v1163_v11, %v1166_v14 }
 0x8e5   : > { %v1168_v16 = vmul.f32 1.442695, %v1167_v15 }
 0x8e7   : > { %1659 = vpow2.f32 %v1168_v16 }
 0x8f4   : > { %v1660_v17 = vpop.eup %1659 }
 0x8f5   : > { %v1170_v18 = vsel %vm365_vm2, %v1660_v17, 0.0 }
 0x8f6   : > { %1171 = vadd.xlane.f32.xlu0 %v1170_v18 }
 0x90c   : > { %1175 = vrot.lane.b32.xlu0 %v2010_v8, %s1830_s24 }
 0x912   : > { %v1080_v0 = vpop.f32.mrf.mxu0 }
 0x913   : > { %v1084_v20 = vadd.f32 %v1080_v0, %v843_v62 }
 0x914   : > { %v1549_v21 = vpop.f32.mrf.mxu0 }
 0x97f   : > { %v1172_v22 = vpop.xlane.xlu0 %1171 }
 0x980   : > { %1661 = vrcp.f32 %v1172_v22 }
 0x983   : > { %v1176_v23 = vpop.permute.xlu0 %1175 }
 0x984   : > { %1556 = vmatpush3.msra.mxu0 %v1176_v23 }
 0x98d   : > { %v1662_v24 = vpop.eup %1661 }
 0x98e   : > { %v1174_v25 = vmul.f32 %v1662_v24, %v1660_v17 }
 0x990   : > { %1558 = vmatmul.mubr.msk.f32.vlgmr.msra.gmra.mxu0 %vm365_vm2, %v1174_v25 }
 0xa50   : > { %v1247_v26 = vpop.f32.mrf.mxu0 }
 0xa51   : > { %1563 = vmatmul.mubr.msk.f32.vlgmr.msra.gmra.mxu1 %vm365_vm2, %v1247_v26 }
 0xa52   : > { %v1559_v8 = vpop.f32.mrf.mxu0 }
 0xb11   : > { %v1321_v27 = vpop.f32.mrf.mxu1 }
 0xb12   : > { %v1325_v28 = vadd.f32 %v1321_v27, %v1084_v20 }
 0xb13   : > { %v1564_v29 = vpop.f32.mrf.mxu1 }
 0xb14   : > { %1326 = vst.msk [vmem:[%s268_s8] sm:$0xff] %vm281_vm1, %v1325_v28 }
 0xb15   : > { %1756 = shalt.err (!%p1753_p9)
}
 0xb16   : > { %s1757_s7 = scalar_lea.hbm %s2087_s30, 128  ;;  %s1761_s16 = scalar_lea.hbm %s2130_s5, 256 }
 0xb17   : > { %p1758_p13 = scmp.ne.s32.totalorder %s2087_s30, %s1757_s7  ;;  %p1762_p4 = scmp.lt.s32.totalorder %s2087_s30, %s2130_s5 }
 0xb18   : > { %p1763_p8 = scmp.lt.s32.totalorder %s1761_s16, %s1757_s7 }
 0xb19   : > { %p1759_p5 = pnand %p1758_p13, %p2146_p0 }
 0xb1a   : > { %p1764_p3 = por %p1763_p8, %p1762_p4 }
 0xb1b   : > { %p1760_p10 = pneg %p1759_p5 }
 0xb1d   : > { %p1765_p11 = pnand %p1764_p3, %p1760_p10 }
 0xb1f   : > { %1768 = shalt.err (!%p1765_p11)
}
 0xb20   : > { %1575 = dma.vmem_to_hbm [thread:$0]  (%p2146_p0), %s1342_s10, 128, %s2087_s30, %s1328_s29  }
 0xb21 PF: > { %s1353_s26 = sand.u32 1, %s1799_s18   ;;  %p2147_p1 = scmp.ne.s32.totalorder %s2136_s25, 0 }
 0xb22   : > { %p2148_p2 = scmp.ge.s32.totalorder %s1811_s21, 2  ;;  %s1354_s8 = scalar_lea.sflag [#allocation4], %s1353_s26 }
 0xb24   : > { %p1589_p6 = pnand %p2148_p2, %p2147_p1 }
 0xb26   : > { %p1590_p12 = pneg %p1589_p6 }
 0xb28   : > { %1794 = dma.done.wait (%p1590_p12), %s1354_s8, 128  }
 0xb29   : > { %1796 = vsyncadd (%p1590_p12), %s1354_s8, 4294967168  ;;  %p19_p7 = scmp.ge.s32.totalorder %s1934_s15, 4   ;;  %s2149_s18 = smov %s1803_s19 }
 0xb2a   : > { %s2150_s19 = smov %s1807_s20  ;;  %s2151_s20 = smov %s1950_s27 }
 0xb2b   : > { %s2152_s21 = smov %s1934_s15  ;;  %21 = sbr.rel (!%p19_p7) target bundleno = 6 (0x6), region = 93 }
 0xb30   :  { %1359 = vsyncpa [#allocation3], 1 }
 0xb31   :  { %1361 = vsyncpa [#allocation3 + $0x1], 1 }
 0xb32   :  { %1362 = vsyncpa [#allocation6], 1 }
 0xb33   :  { %1363 = vsyncpa [#allocation4], 1 }
 0xb34   :  { %1365 = vsyncpa [#allocation4 + $0x1], 1 }

</bundles_post_ra>
